<compile_context>
chip_gen: v5e
topology: v5e:2x2
jax: 0.10.0
libtpu: 0.0.40
codegen_flags: <defaults>
</compile_context>

<pallas_src>
import jax
import jax.numpy as jnp
from jax.experimental import pallas as pl
from jax.experimental.pallas import tpu as pltpu


def _token_embedding_kernel(x_ref, w_ref, b_ref, o_ref):
    """x_ref: (bm, 3*c_in)  w_ref: (3*c_in, d_model)  b_ref: (1, d_model)
    o_ref: (bm, d_model).  Single MXU matmul + bias add."""
    o_ref[...] = (
        jnp.dot(x_ref[...], w_ref[...], preferred_element_type=jnp.float32)
        + b_ref[...]
    ).astype(o_ref.dtype)


def _pick_block_m(m: int) -> int:
    """Largest convenient row-tile that evenly divides M (keeps specs simple)."""
    for bm in (1024, 512, 256, 128, 64, 32, 16, 8):
        if m % bm == 0:
            return bm
    # TODO(synk): for very large M with no multiple-of-8 divisor, tile with a
    # ragged (masked) last block instead of one full-M tile.
    return m


def token_embedding(x: jnp.ndarray, weight: jnp.ndarray, bias: jnp.ndarray) -> jnp.ndarray:
    """Pallas equivalent of TokenEmbedding.forward.

    x      : [B, L, c_in]   (the tensor PyTorch's forward receives)
    weight : [d_model, c_in, 3]   (torch nn.Conv1d weight layout)
    bias   : [d_model]
    returns: [B, L, d_model] float32
    """
    x = x.astype(jnp.float32)
    B, L, c_in = x.shape
    d_model, c_in_w, k = weight.shape
    assert (c_in_w, k) == (c_in, 3), (weight.shape, c_in)

    # Fused conv-tap matrix: rows [k*c_in + c] = weight[:, c, k]  -> (3*c_in, d_model)
    w_cat = jnp.transpose(weight, (2, 1, 0)).reshape(3 * c_in, d_model).astype(jnp.float32)
    bias2d = bias.reshape(1, d_model).astype(jnp.float32)

    # Circular halo folded into the (narrow) channel dim: x_cat is (B*L, 3*c_in).
    # This is layout plumbing on the c_in-wide input; the wide (M, d_model) output
    # stays a single lane-dense slab written directly by the kernel.
    x_cat = jnp.concatenate(
        [jnp.roll(x, 1, axis=1), x, jnp.roll(x, -1, axis=1)], axis=-1
    ).reshape(B * L, 3 * c_in)

    M = B * L
    bm = _pick_block_m(M)
    grid = (M // bm,)

    out = pl.pallas_call(
        _token_embedding_kernel,
        out_shape=jax.ShapeDtypeStruct((M, d_model), jnp.float32),
        grid_spec=pltpu.PrefetchScalarGridSpec(
            num_scalar_prefetch=0,
            grid=grid,
            in_specs=[
                pl.BlockSpec((bm, 3 * c_in), lambda i: (i, 0)),          # x_cat rows
                pl.BlockSpec((3 * c_in, d_model), lambda i: (0, 0)),     # fused taps
                pl.BlockSpec((1, d_model), lambda i: (0, 0)),            # bias
            ],
            out_specs=pl.BlockSpec((bm, d_model), lambda i: (i, 0)),
        ),
        compiler_params=pltpu.CompilerParams(
            dimension_semantics=("parallel",),
        ),
    )(x_cat, w_cat, bias2d)

    return out.reshape(B, L, d_model)


if __name__ == "__main__":
    # Small shapes consistent with the module: batch=2, seq=16, c_in=4, d_model=32.
    B, L, c_in, d_model = 2, 16, 4, 32

    key = jax.random.PRNGKey(0)
    kx, kw, kb = jax.random.split(key, 3)

    x = jax.random.normal(kx, (B, L, c_in), dtype=jnp.float32)

    # kaiming_normal_(mode='fan_in', nonlinearity='leaky_relu'):
    # std = sqrt(2) / sqrt(fan_in),  fan_in = c_in * kernel_size
    fan_in = c_in * 3
    w_std = (2.0 / fan_in) ** 0.5
    weight = w_std * jax.random.normal(kw, (d_model, c_in, 3), dtype=jnp.float32)
    b_bound = 1.0 / fan_in ** 0.5
    bias = jax.random.uniform(kb, (d_model,), jnp.float32, -b_bound, b_bound)

    y = token_embedding(x, weight, bias)
    y = jax.block_until_ready(y)

    # Pure-JAX reference of the circular conv (channels-last form).
    w_taps = jnp.transpose(weight, (2, 1, 0))  # (3, c_in, d_model), w_taps[k] = W[:,:,k].T
    y_ref = (
        jnp.einsum("blc,cd->bld", jnp.roll(x, 1, axis=1), w_taps[0])
        + jnp.einsum("blc,cd->bld", x, w_taps[1])
        + jnp.einsum("blc,cd->bld", jnp.roll(x, -1, axis=1), w_taps[2])
        + bias
    )

    assert y.shape == (B, L, d_model), y.shape
    assert y.dtype == jnp.float32
    max_err = float(jnp.max(jnp.abs(y - y_ref)))
    assert jnp.allclose(y, y_ref, atol=1e-4, rtol=1e-4), max_err

    print("KERNEL_OK")
</pallas_src>

<mosaic_0001>
module attributes {stable_mosaic.version = 11 : i64} {
  func.func @_token_embedding_kernel(%arg0: i32, %arg1: memref<32x12xf32, #tpu.memory_space<vmem>>, %arg2: memref<12x32xf32, #tpu.memory_space<vmem>>, %arg3: memref<1x32xf32, #tpu.memory_space<vmem>>, %arg4: memref<32x32xf32, #tpu.memory_space<vmem>>) attributes {dimension_semantics = [#tpu.dimension_semantics<parallel>], iteration_bounds = array<i64: 1>, scalar_prefetch = 0 : i64, scratch_operands = 0 : i64, tpu.core_type = #tpu.core_type<tc>, window_params = [{transform_indices = @transform_0, window_bounds = array<i64: 32, 12>}, {pipeline_mode = #tpu.pipeline_mode<synchronous>, transform_indices = @transform_1, window_bounds = array<i64: 12, 32>}, {pipeline_mode = #tpu.pipeline_mode<synchronous>, transform_indices = @transform_2, window_bounds = array<i64: 1, 32>}, {transform_indices = @transform_3, window_bounds = array<i64: 32, 32>}]} {
    %c0 = arith.constant 0 : index
    %c0_0 = arith.constant 0 : index
    %0 = vector.load %arg1[%c0, %c0_0] : memref<32x12xf32, #tpu.memory_space<vmem>>, vector<32x12xf32>
    %c0_1 = arith.constant 0 : index
    %c0_2 = arith.constant 0 : index
    %1 = vector.load %arg2[%c0_1, %c0_2] : memref<12x32xf32, #tpu.memory_space<vmem>>, vector<12x32xf32>
    %cst = arith.constant dense<0.000000e+00> : vector<32x32xf32>
    %2 = tpu.matmul %0, %1, %cst {dimension_numbers = #tpu.dot_dimension_numbers<[1], [0], [0], [1], [0, 0, 1, 1], [], []>} : vector<32x12xf32>, vector<12x32xf32>, vector<32x32xf32> -> vector<32x32xf32>
    %c0_3 = arith.constant 0 : index
    %c0_4 = arith.constant 0 : index
    %3 = vector.load %arg3[%c0_3, %c0_4] : memref<1x32xf32, #tpu.memory_space<vmem>>, vector<1x32xf32>
    %4 = vector.broadcast %3 : vector<1x32xf32> to vector<32x32xf32>
    %5 = arith.addf %2, %4 : vector<32x32xf32>
    %c0_5 = arith.constant 0 : index
    %c0_6 = arith.constant 0 : index
    %6 = vector.load %arg4[%c0_5, %c0_6] : memref<32x32xf32, #tpu.memory_space<vmem>>, vector<32x32xf32>
    tpu.vector_store %arg4[%c0_5, %c0_6], %5 {strides = array<i32>} : memref<32x32xf32, #tpu.memory_space<vmem>>, vector<32x32xf32>,
    return
  }
  func.func @transform_0(%arg0: i32) -> (i32, i32) {
    %c0_i32 = arith.constant 0 : i32
    %c0_i32_0 = arith.constant 0 : i32
    return %arg0, %c0_i32 : i32, i32
  }
  func.func @transform_1(%arg0: i32) -> (i32, i32) {
    %c0_i32 = arith.constant 0 : i32
    %c0_i32_0 = arith.constant 0 : i32
    %c0_i32_1 = arith.constant 0 : i32
    return %c0_i32, %c0_i32_0 : i32, i32
  }
  func.func @transform_2(%arg0: i32) -> (i32, i32) {
    %c0_i32 = arith.constant 0 : i32
    %c0_i32_0 = arith.constant 0 : i32
    %c0_i32_1 = arith.constant 0 : i32
    return %c0_i32, %c0_i32_0 : i32, i32
  }
  func.func @transform_3(%arg0: i32) -> (i32, i32) {
    %c0_i32 = arith.constant 0 : i32
    %c0_i32_0 = arith.constant 0 : i32
    return %arg0, %c0_i32 : i32, i32
  }
}

</mosaic_0001>

<bundles_post_ra>
// kernel: tpu_custom_call.1
= control target key start
LH: loop header
LB: loop body
LE: loop exit
PB: predicated region body
PF: predicated region fallthrough
CT: control target
= control target key end

     0   :  { %vm38_vm0 = vcmask 1043456   ;;  %vm25_vm1 = vcmask 97280   ;;  %s186_s0 = inlined_call_operand.vmem [shape: f32[32,12], index: 0, kind: input, shape index: {}]   ;;  %s187_s1 = inlined_call_operand.vmem [shape: f32[12,32], index: 1, kind: input, shape index: {}]   ;;  %s188_s2 = inlined_call_operand.vmem [shape: f32[1,32], index: 2, kind: input, shape index: {}]   ;;  %s189_s3 = inlined_call_operand.hbm [shape: f32[32,32], index: 3, kind: output, shape index: {}]  }
   0x1   :  { %v20_v0 = vld [vmem:[%s187_s1 + $0x8] sm:$0xf]  ;;  %v19_v1 = vld [vmem:[%s187_s1] sm:$0xff]  ;;  %v17_v2 = vld [vmem:[%s186_s0 + $0x10] sm:$0xff] }
   0x2   :  { %100 = vmatpush.msk.msra.mxu2 %vm38_vm0, %v20_v0  ;;  %101 = vmatpush.msk.msra.mxu3 %vm38_vm0, %v20_v0  ;;  %v18_v3 = vld [vmem:[%s186_s0 + $0x18] sm:$0xff] }
   0x3   :  { %94 = vmatpush.msk.msra.mxu0 %vm38_vm0, %v20_v0  ;;  %99 = vmatpush.msk.msra.mxu1 %vm38_vm0, %v20_v0 }
   0x4   :  { %8 = vsyncpa [#allocation3], 0  ;;  %103 = vmatpush.msra.mxu2 %v19_v1  ;;  %104 = vmatpush.msra.mxu3 %v19_v1  ;;  %v15_v4 = vld [vmem:[%s186_s0] sm:$0xff]  ;;  %v16_v5 = vld [vmem:[%s186_s0 + $0x8] sm:$0xff]  ;;  %vm71_vm2 = vcmask 261120   ;;  %s135_s25 = smov [#allocation2]  }
   0x5   :  { %97 = vmatmul.msk.f32.vlgmr.msra.gmra.mxu2 %vm25_vm1, %v17_v2  ;;  %98 = vmatmul.msk.f32.vlgmr.msra.gmra.mxu3 %vm25_vm1, %v18_v3  ;;  %v108_v6 = vld [vmem:[%s188_s2] ss:$0 sm:$0xff]  ;;  %s80_s26 = sshll.u32 %s135_s25, 4  ;;  %s82_s0 = sshll.u32 %s189_s3, 4  ;;  %s81_s26 = int_to_ptr.vmem [resolvable:$true] %s80_s26  ;;  %s83_s0 = int_to_ptr.hbm [resolvable:$true] %s82_s0 }
   0x6   :  { %57 = vmatpush.msra.mxu0 %v19_v1  ;;  %102 = vmatpush.msra.mxu1 %v19_v1  ;;  %s136_s2 = smov 128   ;;  %s137_s29 = smov 8  }
   0x7   :  { %95 = vmatmul.msk.f32.vlgmr.msra.gmra.mxu0 %vm25_vm1, %v15_v4  ;;  %96 = vmatmul.msk.f32.vlgmr.msra.gmra.mxu1 %vm25_vm1, %v16_v5 }
  0x84   :  { %v59_v7 = vpop.f32.mrf.mxu0  ;;  %v62_v8 = vpop.f32.mrf.mxu1 }
  0x85   :  { %v60_v9 = vadd.f32 %v108_v6, %v59_v7  ;;  %v63_v10 = vadd.f32 %v108_v6, %v62_v8 }
  0x87   :  { %72 = vst.msk [vmem:[#allocation2] sm:$0xff] %vm71_vm2, %v60_v9 }
  0x88   :  { %73 = vst.msk [vmem:[#allocation2 + $0x8] sm:$0xff] %vm71_vm2, %v63_v10  ;;  %v65_v11 = vpop.f32.mrf.mxu2  ;;  %v68_v12 = vpop.f32.mrf.mxu3 }
  0x89   :  { %v66_v13 = vadd.f32 %v108_v6, %v65_v11  ;;  %v69_v14 = vadd.f32 %v108_v6, %v68_v12 }
  0x8b   :  { %74 = vst.msk [vmem:[#allocation2 + $0x10] sm:$0xff] %vm71_vm2, %v66_v13 }
  0x8c   :  { %75 = vst.msk [vmem:[#allocation2 + $0x18] sm:$0xff] %vm71_vm2, %v69_v14 }
  0x8d   :  { %88 = dma.vmem_to_hbm [thread:$0]  %s81_s26, 512, %s83_s0, [#allocation3], %s136_s2, %s136_s2, %s137_s29  }
  0x8e   :  { %133 = dma.done.wait [#allocation3], 512  }
  0x8f   :  { %134 = vsyncadd [#allocation3], 4294966784 }
  0x90   :  { %93 = vsyncpa [#allocation3], 1 }

</bundles_post_ra>
